<compile_context>
chip_gen: v5e
topology: v5e:2x2
jax: 0.10.0
libtpu: 0.0.40
codegen_flags: <defaults>
</compile_context>

<pallas_src>
from functools import partial

import jax
import jax.numpy as jnp
from jax.experimental import pallas as pl
from jax.experimental.pallas import tpu as pltpu


def _round_up(x, m):
    return (x + m - 1) // m * m


def _vmem_capacity_bytes():
    try:
        info = pltpu.get_tpu_info()
        return int(getattr(info, "vmem_capacity_bytes", 64 << 20))
    except Exception:
        return 64 << 20  # v7x physical VMEM — the smallest of current generations


def _choose_tm(S_needed, th, C, Nc_pad, N):
    """Lane-tile width: a multiple of the halo tile th (itself a multiple of 128).

    Picks the biggest tile such that (a) the double-buffered A/out pipeline plus the
    in-kernel shifted copies and the resident B bank fit a conservative fraction of
    this generation's physical VMEM, (b) the per-sample extent is not grossly
    over-padded, and (c) the grid keeps >= 4 steps when possible so v7x's two
    TensorCores each get >= 2 steps of DMA/compute overlap."""
    vmem_cap = _vmem_capacity_bytes()
    budget = int(vmem_cap * 0.40)
    per_col = 4 * (8 * C + 4 * Nc_pad)           # rough live f32 bytes per m-column
    tm = max(th, (budget // per_col) // th * th)
    tm = min(tm, max(th, (32768 // th) * th))    # per-step ceiling (review: 16k-32k)
    tm = min(tm, _round_up(S_needed, th))        # no gross per-sample padding
    while tm > th and N * pl.cdiv(S_needed, tm) < 4:
        tm = max(th, _round_up(tm // 2, th))
    return tm


def _upsample_mm_kernel(b_ref, bias_ref, a0_ref, a1_ref, o_ref, *, offsets):
    """o[a, m] = bias[a] + sum_{j, c} B[j, a, c] * A[c, m + offsets[j]].

    a0_ref: (C, tm) current lane tile of the flattened padded input.
    a1_ref: (C, th) halo = first th columns of the next tile (offsets[j] <= th).
    b_ref:  (4, Nc_pad, C) phase sub-kernel bank (constant index map -> resident).
    """
    a0 = a0_ref[...]                                        # (C, tm)
    tm = a0.shape[-1]
    acc = jnp.dot(b_ref[0], a0, preferred_element_type=jnp.float32)
    cat = jnp.concatenate([a0, a1_ref[...]], axis=-1)       # (C, tm + th), VMEM-only
    for j in range(1, 4):
        off = offsets[j]                                    # static lane offset
        acc += jnp.dot(b_ref[j], cat[:, off:off + tm],
                       preferred_element_type=jnp.float32)
    o_ref[...] = (acc + bias_ref[...]).astype(o_ref.dtype)


def upsample_forward(x, w_t, bias):
    """ConvTranspose2d(C, C//2, kernel_size=4, stride=2, padding=1).

    x:    [N, C, H, W]      (NCHW, as PyTorch)
    w_t:  [C, C//2, 4, 4]   (PyTorch ConvTranspose2d weight layout [in, out, kH, kW])
    bias: [C//2]
    returns [N, C//2, 2H, 2W]
    """
    N, C, H, W = x.shape
    Cout = w_t.shape[1]
    Nc = 4 * Cout                       # output columns: (ry, rx, co) — four stride-2 phases
    Nc_pad = _round_up(Nc, 8)           # dense f32 sublanes even for odd Cout

    # ---- phase-regrouped weights: B[(dy,dx), (ry,rx,co), c] = w_t[c, co, 3-ry-2dy, 3-rx-2dx]
    k_map = jnp.array([[3, 1], [2, 0]], dtype=jnp.int32)     # ky = k_map[ry, dy]
    wsub = w_t[:, :, k_map, :]                               # [C, Cout, ry, dy, kw]
    wsub = wsub[:, :, :, :, k_map]                           # [C, Cout, ry, dy, rx, dx]
    bmat = wsub.transpose(3, 5, 2, 4, 1, 0).reshape(4, Nc, C)
    bias_col = jnp.tile(bias, 4).reshape(Nc, 1)
    if Nc_pad != Nc:
        bmat = jnp.pad(bmat, ((0, 0), (0, Nc_pad - Nc), (0, 0)))
        bias_col = jnp.pad(bias_col, ((0, Nc_pad - Nc), (0, 0)))

    # ---- 1-padded input, flattened row-major per sample (NO patches tensor in HBM).
    # Output phase (ry,rx) at (qy,qx) reads padded pixels (qy+ry+dy, qx+rx+dx); with
    # m = py*(W+2)+px those are flat offsets m + dy*(W+2)+dx for the origin py=qy+ry, px=qx+rx.
    x_pad = jnp.pad(x, ((0, 0), (0, 0), (1, 1), (1, 1)))     # [N, C, H+2, W+2]
    Wp2 = W + 2
    S_full = (H + 2) * Wp2
    S_needed = (H + 1) * Wp2                                 # covers all used patch origins
    th = _round_up(W + 3, 128)                               # halo tile >= max lane offset
    tm = _choose_tm(S_needed, th, C, Nc_pad, N)              # multiple of th
    ntiles = pl.cdiv(S_needed, tm)
    Spad = ntiles * tm + tm                                  # +1 tile keeps the halo read in-bounds
    flat = jnp.pad(x_pad.reshape(N, C, S_full),
                   ((0, 0), (0, 0), (0, Spad - S_full)))     # [N, C, Spad]

    offsets = (0, 1, Wp2, Wp2 + 1)                           # (dy,dx) -> dy*(W+2)+dx
    kernel = partial(_upsample_mm_kernel, offsets=offsets)

    vmem_cap = _vmem_capacity_bytes()
    flops = 2 * N * ntiles * tm * Nc_pad * 4 * C
    bytes_accessed = 4 * (N * C * Spad + N * ntiles * C * th
                          + N * Nc_pad * ntiles * tm + 4 * Nc_pad * C + Nc_pad)

    zt = pl.pallas_call(
        kernel,
        out_shape=jax.ShapeDtypeStruct((N, Nc_pad, ntiles * tm), x.dtype),
        grid_spec=pltpu.PrefetchScalarGridSpec(
            num_scalar_prefetch=0,
            grid=(N, ntiles),
            in_specs=[
                # resident phase-weight bank + bias (constant block index -> fetched once)
                pl.BlockSpec((4, Nc_pad, C), lambda n, i: (0, 0, 0)),
                pl.BlockSpec((Nc_pad, 1), lambda n, i: (0, 0)),
                # streamed lane tile of the flattened padded input (lane axis = m, dense)
                pl.BlockSpec((pl.Squeezed(), C, tm), lambda n, i: (n, 0, i)),
                # halo: first th columns of the NEXT tm-tile (tm % th == 0 by construction)
                pl.BlockSpec((pl.Squeezed(), C, th),
                             lambda n, i: (n, 0, (i + 1) * (tm // th))),
            ],
            out_specs=pl.BlockSpec((pl.Squeezed(), Nc_pad, tm),
                                   lambda n, i: (n, 0, i)),
        ),
        compiler_params=pltpu.CompilerParams(
            dimension_semantics=("parallel", "parallel"),
            vmem_limit_bytes=min(int(vmem_cap * 0.9), 96 << 20)),
        cost_estimate=pl.CostEstimate(flops=flops, transcendentals=0,
                                      bytes_accessed=bytes_accessed),
    )(bmat, bias_col, flat, flat)                            # [N, Nc_pad, ntiles*tm]

    # ---- pixel-shuffle scatter (cheap XLA glue on ~output-sized data) ----
    z = zt[:, :Nc, :S_needed].reshape(N, 2, 2, Cout, H + 1, Wp2)   # (n, ry, rx, co, py, px)
    phases = jnp.stack([z[:, ry, rx, :, ry:ry + H, rx:rx + W]
                        for ry in (0, 1) for rx in (0, 1)], axis=-1)  # [N,Cout,H,W,4]
    y = (phases.reshape(N, Cout, H, W, 2, 2)
               .transpose(0, 1, 2, 4, 3, 5)
               .reshape(N, Cout, 2 * H, 2 * W))
    return y


def _reference(x, w_t, bias):
    """Pure-XLA reference: transposed conv via lhs-dilated regular conv."""
    w_conv = jnp.flip(w_t, axis=(2, 3)).transpose(1, 0, 2, 3)       # [Cout, Cin, 4, 4]
    y = jax.lax.conv_general_dilated(
        x, w_conv,
        window_strides=(1, 1),
        padding=((2, 2), (2, 2)),
        lhs_dilation=(2, 2),
        rhs_dilation=(1, 1),
        dimension_numbers=('NCHW', 'OIHW', 'NCHW'))
    return y + bias[None, :, None, None]


if __name__ == "__main__":
    key = jax.random.PRNGKey(0)
    k_x, k_w, k_b = jax.random.split(key, 3)

    N, C, H, W = 2, 4, 16, 16
    Cout = C // 2

    x = jax.random.normal(k_x, (N, C, H, W), dtype=jnp.float32)
    # deterministic "parameters" (shapes match nn.ConvTranspose2d(C, C//2, 4, 2, 1))
    fan = C * 4 * 4
    w_t = jax.random.normal(k_w, (C, Cout, 4, 4), dtype=jnp.float32) / jnp.sqrt(fan)
    bias = jax.random.normal(k_b, (Cout,), dtype=jnp.float32) * 0.01

    y = jax.jit(upsample_forward)(x, w_t, bias)
    jax.block_until_ready(y)

    assert y.shape == (N, Cout, 2 * H, 2 * W), y.shape

    y_ref = _reference(x, w_t, bias)
    max_err = float(jnp.max(jnp.abs(y - y_ref)))
    assert jnp.allclose(y, y_ref, atol=1e-4, rtol=1e-4), max_err

    print("KERNEL_OK")
</pallas_src>

<mosaic_0001>
module attributes {stable_mosaic.version = 11 : i64} {
  func.func @_upsample_mm_kernel(%arg0: i32, %arg1: i32, %arg2: memref<4x8x4xf32, #tpu.memory_space<vmem>>, %arg3: memref<8x1xf32, #tpu.memory_space<vmem>>, %arg4: memref<1x4x256xf32, #tpu.memory_space<vmem>>, %arg5: memref<1x4x128xf32, #tpu.memory_space<vmem>>, %arg6: memref<1x8x256xf32, #tpu.memory_space<vmem>>) attributes {dimension_semantics = [#tpu.dimension_semantics<parallel>, #tpu.dimension_semantics<parallel>], iteration_bounds = array<i64: 2, 2>, scalar_prefetch = 0 : i64, scratch_operands = 0 : i64, tpu.core_type = #tpu.core_type<tc>, window_params = [{pipeline_mode = #tpu.pipeline_mode<synchronous>, transform_indices = @transform_0, window_bounds = array<i64: 4, 8, 4>}, {pipeline_mode = #tpu.pipeline_mode<synchronous>, transform_indices = @transform_1, window_bounds = array<i64: 8, 1>}, {transform_indices = @transform_2, window_bounds = array<i64: 1, 4, 256>}, {transform_indices = @transform_3, window_bounds = array<i64: 1, 4, 128>}, {transform_indices = @transform_4, window_bounds = array<i64: 1, 8, 256>}]} {
    %c0 = arith.constant 0 : index
    %c0_0 = arith.constant 0 : index
    %c0_1 = arith.constant 0 : index
    %0 = vector.load %arg4[%c0, %c0_0, %c0_1] : memref<1x4x256xf32, #tpu.memory_space<vmem>>, vector<1x4x256xf32>
    %1 = vector.shape_cast %0 : vector<1x4x256xf32> to vector<4x256xf32>
    %c0_2 = arith.constant 0 : index
    %c0_3 = arith.constant 0 : index
    %c0_4 = arith.constant 0 : index
    %2 = vector.load %arg2[%c0_2, %c0_3, %c0_4] : memref<4x8x4xf32, #tpu.memory_space<vmem>>, vector<1x8x4xf32>
    %3 = vector.shape_cast %2 : vector<1x8x4xf32> to vector<8x4xf32>
    %cst = arith.constant dense<0.000000e+00> : vector<8x256xf32>
    %4 = tpu.matmul %3, %1, %cst {dimension_numbers = #tpu.dot_dimension_numbers<[1], [0], [0], [1], [0, 0, 1, 1], [], []>} : vector<8x4xf32>, vector<4x256xf32>, vector<8x256xf32> -> vector<8x256xf32>
    %c0_5 = arith.constant 0 : index
    %c0_6 = arith.constant 0 : index
    %c0_7 = arith.constant 0 : index
    %5 = vector.load %arg5[%c0_5, %c0_6, %c0_7] : memref<1x4x128xf32, #tpu.memory_space<vmem>>, vector<1x4x128xf32>
    %6 = vector.shape_cast %5 : vector<1x4x128xf32> to vector<4x128xf32>
    %7 = tpu.concatenate %1, %6 in 1 : vector<4x256xf32>, vector<4x128xf32> -> vector<4x384xf32>
    %c1 = arith.constant 1 : index
    %c0_8 = arith.constant 0 : index
    %c0_9 = arith.constant 0 : index
    %8 = vector.load %arg2[%c1, %c0_8, %c0_9] : memref<4x8x4xf32, #tpu.memory_space<vmem>>, vector<1x8x4xf32>
    %9 = vector.shape_cast %8 : vector<1x8x4xf32> to vector<8x4xf32>
    %10 = vector.extract_strided_slice %7 {offsets = [0, 1], sizes = [4, 256], strides = [1, 1]} : vector<4x384xf32> to vector<4x256xf32>
    %cst_10 = arith.constant dense<0.000000e+00> : vector<8x256xf32>
    %11 = tpu.matmul %9, %10, %cst_10 {dimension_numbers = #tpu.dot_dimension_numbers<[1], [0], [0], [1], [0, 0, 1, 1], [], []>} : vector<8x4xf32>, vector<4x256xf32>, vector<8x256xf32> -> vector<8x256xf32>
    %12 = arith.addf %4, %11 : vector<8x256xf32>
    %c2 = arith.constant 2 : index
    %c0_11 = arith.constant 0 : index
    %c0_12 = arith.constant 0 : index
    %13 = vector.load %arg2[%c2, %c0_11, %c0_12] : memref<4x8x4xf32, #tpu.memory_space<vmem>>, vector<1x8x4xf32>
    %14 = vector.shape_cast %13 : vector<1x8x4xf32> to vector<8x4xf32>
    %15 = vector.extract_strided_slice %7 {offsets = [0, 18], sizes = [4, 256], strides = [1, 1]} : vector<4x384xf32> to vector<4x256xf32>
    %cst_13 = arith.constant dense<0.000000e+00> : vector<8x256xf32>
    %16 = tpu.matmul %14, %15, %cst_13 {dimension_numbers = #tpu.dot_dimension_numbers<[1], [0], [0], [1], [0, 0, 1, 1], [], []>} : vector<8x4xf32>, vector<4x256xf32>, vector<8x256xf32> -> vector<8x256xf32>
    %17 = arith.addf %12, %16 : vector<8x256xf32>
    %c3 = arith.constant 3 : index
    %c0_14 = arith.constant 0 : index
    %c0_15 = arith.constant 0 : index
    %18 = vector.load %arg2[%c3, %c0_14, %c0_15] : memref<4x8x4xf32, #tpu.memory_space<vmem>>, vector<1x8x4xf32>
    %19 = vector.shape_cast %18 : vector<1x8x4xf32> to vector<8x4xf32>
    %20 = vector.extract_strided_slice %7 {offsets = [0, 19], sizes = [4, 256], strides = [1, 1]} : vector<4x384xf32> to vector<4x256xf32>
    %cst_16 = arith.constant dense<0.000000e+00> : vector<8x256xf32>
    %21 = tpu.matmul %19, %20, %cst_16 {dimension_numbers = #tpu.dot_dimension_numbers<[1], [0], [0], [1], [0, 0, 1, 1], [], []>} : vector<8x4xf32>, vector<4x256xf32>, vector<8x256xf32> -> vector<8x256xf32>
    %22 = arith.addf %17, %21 : vector<8x256xf32>
    %c0_17 = arith.constant 0 : index
    %c0_18 = arith.constant 0 : index
    %23 = vector.load %arg3[%c0_17, %c0_18] : memref<8x1xf32, #tpu.memory_space<vmem>>, vector<8x1xf32>
    %24 = vector.broadcast %23 : vector<8x1xf32> to vector<8x256xf32>
    %25 = arith.addf %22, %24 : vector<8x256xf32>
    %c0_19 = arith.constant 0 : index
    %c0_20 = arith.constant 0 : index
    %c0_21 = arith.constant 0 : index
    %26 = vector.load %arg6[%c0_19, %c0_20, %c0_21] : memref<1x8x256xf32, #tpu.memory_space<vmem>>, vector<1x8x256xf32>
    %27 = vector.shape_cast %26 : vector<1x8x256xf32> to vector<8x256xf32>
    %28 = vector.shape_cast %25 : vector<8x256xf32> to vector<1x8x256xf32>
    tpu.vector_store %arg6[%c0_19, %c0_20, %c0_21], %28 {strides = array<i32>} : memref<1x8x256xf32, #tpu.memory_space<vmem>>, vector<1x8x256xf32>,
    return
  }
  func.func @transform_0(%arg0: i32, %arg1: i32) -> (i32, i32, i32) {
    %c0_i32 = arith.constant 0 : i32
    %c0_i32_0 = arith.constant 0 : i32
    %c0_i32_1 = arith.constant 0 : i32
    %c0_i32_2 = arith.constant 0 : i32
    return %c0_i32, %c0_i32_0, %c0_i32_1 : i32, i32, i32
  }
  func.func @transform_1(%arg0: i32, %arg1: i32) -> (i32, i32) {
    %c0_i32 = arith.constant 0 : i32
    %c0_i32_0 = arith.constant 0 : i32
    %c0_i32_1 = arith.constant 0 : i32
    return %c0_i32, %c0_i32_0 : i32, i32
  }
  func.func @transform_2(%arg0: i32, %arg1: i32) -> (i32, i32, i32) {
    %c0_i32 = arith.constant 0 : i32
    %c0_i32_0 = arith.constant 0 : i32
    return %arg0, %c0_i32, %arg1 : i32, i32, i32
  }
  func.func @transform_3(%arg0: i32, %arg1: i32) -> (i32, i32, i32) {
    %c1_i32 = arith.constant 1 : i32
    %0 = arith.addi %arg1, %c1_i32 : i32
    %c2_i32 = arith.constant 2 : i32
    %1 = arith.muli %0, %c2_i32 : i32
    %c0_i32 = arith.constant 0 : i32
    %c0_i32_0 = arith.constant 0 : i32
    return %arg0, %c0_i32, %1 : i32, i32, i32
  }
  func.func @transform_4(%arg0: i32, %arg1: i32) -> (i32, i32, i32) {
    %c0_i32 = arith.constant 0 : i32
    %c0_i32_0 = arith.constant 0 : i32
    return %arg0, %c0_i32, %arg1 : i32, i32, i32
  }
}

</mosaic_0001>

<bundles_post_ra>
// kernel: tile.0
= control target key start
LH: loop header
LB: loop body
LE: loop exit
PB: predicated region body
PF: predicated region fallthrough
CT: control target
= control target key end

     0   :  { %vm7_vm0 = vcmask 7168   ;;  %s37_s0 = inlined_call_operand.vmem [shape: f32[4,2], index: 0, kind: input, shape index: {}]   ;;  %s38_s1 = inlined_call_operand.vmem [shape: f32[8,1], index: 1, kind: output, shape index: {}]  }
   0x1   :  { %v4_v0 = vld [vmem:[%s37_s0] sm:$0xf]  ;;  %s17_s0 = smov 127  }
   0x2   :  { %5 = vst [vmem:[#allocation0] sm:$0xf] %v4_v0 }
   0x9   :  { %v9_v1 = vld [vmem:[#allocation0] sm:$0xf]  }
   0xa   :  { %v6_v2 = vld [vmem:[#allocation0] sm:$0xf]   ;;  %10 = vrot.lane.b32.xlu0 %v9_v1, %s17_s0 }
   0xb   :  { %8 = vst.msk [vmem:[%s38_s1] ss:$2 sm:$0xf] %vm7_vm0, %v6_v2  }
  0x7c   :  { %v11_v3 = vpop.permute.xlu0 %10  }
  0x7d   :  { %15 = vst.msk [vmem:[%s38_s1 + $0x1] ss:$2 sm:$0xf] %vm7_vm0, %v11_v3  }

// kernel: tile.8
= control target key start
LH: loop header
LB: loop body
LE: loop exit
PB: predicated region body
PF: predicated region fallthrough
CT: control target
= control target key end

     0   :  { %s22_s0 = inlined_call_operand.vmem [shape: f32[2], index: 0, kind: input, shape index: {}]   ;;  %s23_s1 = inlined_call_operand.vmem [shape: f32[4,2], index: 1, kind: output, shape index: {}]  }
   0x1   :  { %v4_v0 = vld [vmem:[%s22_s0] ss:$0 sm:$0xff] }
   0x2   :  { %5 = vst [vmem:[%s23_s1] sm:$0xf] %v4_v0 }

// kernel: upsample_forward.1
= control target key start
LH: loop header
LB: loop body
LE: loop exit
PB: predicated region body
PF: predicated region fallthrough
CT: control target
= control target key end

     0   :  { %s794_s15 = smov 0   ;;  %s796_s16 = smov 0   ;;  %s890_s0 = inlined_call_operand.vmem [shape: f32[4,8,4], index: 0, kind: input, shape index: {}]   ;;  %s891_s1 = inlined_call_operand.vmem [shape: f32[8,1], index: 1, kind: input, shape index: {}]   ;;  %s892_s2 = inlined_call_operand.vmem [shape: f32[2,4,768], index: 2, kind: input, shape index: {}, may-alias: {2,3}]   ;;  %s893_s3 = inlined_call_operand.vmem [shape: f32[2,4,768], index: 3, kind: input, shape index: {}, may-alias: {2,3}]   ;;  %s894_s4 = inlined_call_operand.vmem [shape: f32[2,8,512], index: 4, kind: output, shape index: {}]  }
   0x1   :  { %s798_s17 = smov 0   ;;  %s800_s18 = smov 0  }
   0x2   :  { %s802_s19 = smov 0  }
   0x3 LB: > { %s23_s20 = sadd.s32 1, %s755_s17  ;;  %s26_s21 = sadd.s32 1, %s759_s18  ;;  %s763_s19 = sphi %s802_s19, %s14_s19   ;;  %s759_s18 = sphi %s800_s18, %s898_s18   ;;  %s755_s17 = sphi %s798_s17, %s897_s17   ;;  %s751_s16 = sphi %s796_s16, %s896_s16   ;;  %s747_s15 = sphi %s794_s15, %s895_s15  }
   0x4   : > { %p24_p0 = scmp.ge.s32.totalorder %s23_s20, 2  ;;  %p644_p1 = scmp.ge.s32.totalorder %s763_s19, 1 }
   0x5   : > { %p206_p2 = scmp.lt.s32.totalorder %s763_s19, 5 }
   0x6   : > { %s900_s20 = smov (%p24_p0, %s23_s20), 0  ;;  %s902_s21 = smov (!%p24_p0, %s26_s21), %s759_s18 }
   0x7   : > { %p207_p3 = pnand %p644_p1, %p206_p2  ;;  %p28_p4 = scmp.ge.s32.totalorder %s902_s21, 2 }
   0x8   : > { %s824_s22 = sshll.u32 (!%p207_p3), %s747_s15, 1  ;;  %p251_p5 = scmp.lt.s32.totalorder (!%p207_p3), %s751_s16, 1 }
   0x9   : > { %s904_s21 = smov (%p28_p4, %s902_s21), 0  ;;  %210 = sbr.rel (%p207_p3) target bundleno = 297 (0x129), region = 36 }
   0xa   : > { %s678_s23 = sadd.s32 (!%p207_p3), 2, %s824_s22  ;;  %p253_p7 = scmp.lt.s32.totalorder (!%p207_p3), %s824_s22, 5 }
   0xb   : > { %p264_p6 = scmp.lt.s32.totalorder (!%p207_p3), %s678_s23, 5  ;;  %s765_s10 = smov (!%p207_p3), 127  }
   0xc   : > { %s766_s11 = smov (!%p207_p3), 109   ;;  %s767_s12 = smov (!%p207_p3), 110  }
   0xd   : > { %p275_p8 = scmp.lt.s32.totalorder (!%p207_p3), %s824_s22, 3 }
   0xe   : > { %s906_s16 = smov (!%p251_p5, %s751_s16), 1  ;;  %s908_s23 = smov (!%p264_p6, %s678_s23), 5  ;;  %vm305_vm0 = vcmask 1043456   ;;  %v283_v7 = vld [vmem:[%s890_s0] sm:$0xff]  ;;  %vm301_vm1 = vcmask 31744   ;;  %vm468_vm2 = vcmask 891904  }
   0xf   : > { %s679_s24 = smul.u32 6, %s906_s16  ;;  %v666_v10 = vld [vmem:[%s890_s0 + $0x18] sm:$0xff]  ;;  %v520_v11 = vld [vmem:[%s891_s1] sm:$0xff]  ;;  %v768_v12 = vmov 0   ;;  %vm298_vm3 = vcmask 1039360   ;;  %vm408_vm4 = vcmask 900096  }
  0x10   : > { %s254_s25 = scalar_select %p253_p7, %s824_s22, 5  ;;  %724 = vset.pattern.permute.xlu0 %v768_v12  ;;  %v652_v19 = vld [vmem:[%s890_s0 + $0x8] sm:$0xff]  ;;  %v661_v25 = vld [vmem:[%s890_s0 + $0x10] sm:$0xff] }
  0x11   : > { %s267_s26 = sadd.s32 %s679_s24, %s908_s23  ;;  %s910_s22 = smov (!%p275_p8, %s824_s22), 3 }
  0x12   : > { %s648_s27 = sshll.u32 %s267_s26, 2  ;;  %s256_s28 = sadd.s32 %s679_s24, %s254_s25 }
  0x13   : > { %s269_s5 = scalar_lea.vmem %s893_s3, %s648_s27  ;;  %s646_s6 = sshll.u32 %s256_s28, 2 }
  0x14   : > { %v284_v0 = vld [vmem:[%s269_s5] sm:$0xf]  ;;  %s258_s9 = scalar_lea.vmem %s892_s2, %s646_s6  ;;  %s650_s30 = sshll.u32 %s906_s16, 2 }
  0x15   : > { %296 = vrot.lane.b32.xlu1 %v284_v0, %s765_s10  ;;  %v282_v1 = vld [vmem:[%s258_s9] sm:$0xff]  ;;  %466 = vrot.lane.b32.xlu2 %v284_v0, %s766_s11  ;;  %s278_s5 = sadd.s32 %s650_s30, %s910_s22 }
  0x16   : > { %286 = vst [vmem:[#allocation1] ss:$2 sm:$0xff] %v282_v1  ;;  %s651_s6 = sshll.u32 %s278_s5, 3 }
  0x17   : > { %s280_s9 = scalar_lea.vmem %s894_s4, %s651_s6 }
  0x1d   : > { %v287_v2 = vld.sshfl [vmem:[#allocation1] sm:$0xff pattern:$0x75316420]  ;;  %v288_v3 = vld.sshfl [vmem:[#allocation1 + $0x8] sm:$0xff pattern:$0x75316420] }
  0x1e   : > { %292 = vrot.lane.b32.xlu0 %v287_v2, %s765_s10  ;;  %462 = vrot.lane.b32.xlu1 %v287_v2, %s766_s11  ;;  %350 = vst [vmem:[#allocation1] ss:$2 sm:$0xff] %v282_v1 }
  0x1f   : > { %464 = vrot.lane.b32.xlu2 %v288_v3, %s766_s11 }
  0x25   : > { %v352_v5 = vld.sshfl [vmem:[#allocation1 + $0x8] sm:$0xff pattern:$0x75316420]  ;;  %v351_v6 = vld.sshfl [vmem:[#allocation1] sm:$0xff pattern:$0x75316420] }
  0x26   : > { %294 = vrot.lane.b32.xlu0 %v288_v3, %s765_s10  ;;  %404 = vrot.lane.b32.xlu1 %v288_v3, %s767_s12 }
  0x27   : > { %406 = vrot.lane.b32.xlu2 %v284_v0, %s767_s12  ;;  %659 = vmatpush.msk.msra.mxu3 %vm305_vm0, %v352_v5 }
  0x28   : > { %657 = vmatpush.msk.msra.mxu2 %vm305_vm0, %v351_v6  ;;  %660 = vmatmul.msk.f32.vlgmr.msra.gmra.mxu3 %vm301_vm1, %v283_v7 }
  0x29   : > { %658 = vmatmul.msk.f32.vlgmr.msra.gmra.mxu2 %vm301_vm1, %v283_v7 }
  0x2e   : > { %402 = vrot.lane.b32.xlu0 %v287_v2, %s767_s12 }
  0x36   : > { %523 = vperm.xlu0 %724, %v520_v11  }
  0x6f   : > { %v467_v4 = vpop.permute.xlu2 %466 }
  0x79   : > { %v465_v8 = vpop.permute.xlu2 %464 }
  0x7a   : > { %v470_v9 = vsel %vm468_vm2, %v465_v8, %v467_v4 }
  0x7b   : > { %669 = vmatpush.msk.msrb.mxu3 %vm305_vm0, %v470_v9 }
  0x7c   : > { %670 = vmatmul.msk.f32.vlgmr.msrb.gmra.mxu3 %vm301_vm1, %v666_v10 }
  0x81   : > { %v407_v17 = vpop.permute.xlu2 %406 }
  0x87   : > { %v297_v13 = vpop.permute.xlu1 %296 }
  0x90   : > { %v293_v14 = vpop.permute.xlu0 %292  ;;  %v463_v15 = vpop.permute.xlu1 %462 }
  0x91   : > { %v469_v16 = vsel %vm468_vm2, %v463_v15, %v465_v8 }
  0x92   : > { %667 = vmatpush.msk.msrb.mxu2 %vm305_vm0, %v469_v16 }
  0x93   : > { %668 = vmatmul.msk.f32.vlgmr.msrb.gmra.mxu2 %vm301_vm1, %v666_v10 }
  0x98   : > { %v295_v18 = vpop.permute.xlu0 %294  ;;  %v405_v20 = vpop.permute.xlu1 %404 }
  0x99   : > { %v299_v21 = vsel %vm298_vm3, %v293_v14, %v295_v18  ;;  %v300_v22 = vsel %vm298_vm3, %v295_v18, %v297_v13  ;;  %v410_v23 = vsel %vm408_vm4, %v405_v20, %v407_v17 }
  0x9a   : > { %653 = vmatpush.msk.msra.mxu0 %vm305_vm0, %v299_v21  ;;  %655 = vmatpush.msk.msra.mxu1 %vm305_vm0, %v300_v22 }
  0x9b   : > { %654 = vmatmul.msk.f32.vlgmr.msra.gmra.mxu0 %vm301_vm1, %v652_v19  ;;  %656 = vmatmul.msk.f32.vlgmr.msra.gmra.mxu1 %vm301_vm1, %v652_v19 }
  0x9c   : > { %664 = vmatpush.msk.msrb.mxu1 %vm305_vm0, %v410_v23 }
  0xa0   : > { %v403_v24 = vpop.permute.xlu0 %402 }
  0xa1   : > { %v409_v26 = vsel %vm408_vm4, %v403_v24, %v405_v20 }
  0xa2   : > { %662 = vmatpush.msk.msrb.mxu0 %vm305_vm0, %v409_v26 }
  0xa3   : > { %663 = vmatmul.msk.f32.vlgmr.msrb.gmra.mxu0 %vm301_vm1, %v661_v25  ;;  %665 = vmatmul.msk.f32.vlgmr.msrb.gmra.mxu1 %vm301_vm1, %v661_v25 }
  0xa8   : > { %v524_v39 = vpop.permute.xlu0 %523 }
  0xab   : > { %v397_v28 = vpop.f32.mrf.mxu3 }
  0xac   : > { %v377_v27 = vpop.f32.mrf.mxu2 }
  0xff   : > { %v515_v34 = vpop.f32.mrf.mxu3 }
 0x116   : > { %v495_v33 = vpop.f32.mrf.mxu2 }
 0x118   : > { %v327_v29 = vpop.f32.mrf.mxu0  ;;  %v347_v30 = vpop.f32.mrf.mxu1 }
 0x119   : > { %v378_v31 = vadd.f32 %v377_v27, %v327_v29  ;;  %v398_v32 = vadd.f32 %v397_v28, %v347_v30 }
 0x120   : > { %v435_v35 = vpop.f32.mrf.mxu0  ;;  %v455_v36 = vpop.f32.mrf.mxu1 }
 0x121   : > { %v458_v37 = vadd.f32 %v435_v35, %v378_v31  ;;  %v459_v38 = vadd.f32 %v455_v36, %v398_v32 }
 0x123   : > { %v518_v40 = vadd.f32 %v495_v33, %v458_v37  ;;  %v519_v41 = vadd.f32 %v515_v34, %v459_v38 }
 0x125   : > { %v526_v42 = vadd.f32 %v524_v39, %v518_v40  ;;  %v527_v43 = vadd.f32 %v524_v39, %v519_v41 }
 0x127   : > { %528 = vst [vmem:[%s280_s9] sm:$0xff] %v526_v42 }
 0x128   : > { %529 = vst [vmem:[%s280_s9 + $0x8] sm:$0xff] %v527_v43 }
 0x129 PF: > { %s14_s19 = sadd.s32 1, %s763_s19   ;;  %s895_s15 = smov %s755_s17 }
 0x12a   : > { %p11_p9 = scmp.ge.s32.totalorder %s14_s19, 6   ;;  %s896_s16 = smov %s759_s18 }
 0x12b   : > { %s897_s17 = smov %s900_s20  ;;  %s898_s18 = smov %s904_s21 }
 0x12c   :  { %13 = sbr.rel (!%p11_p9) target bundleno = 3 (0x3), region = 72 }

</bundles_post_ra>
